<compile_context>
chip_gen: v7x
topology: tpu7x:2x2x1
jax: 0.10.0
libtpu: 0.0.40
codegen_flags: <defaults>
</compile_context>

<pallas_src>
import jax
import jax.numpy as jnp
from jax.experimental import pallas as pl
from jax.experimental.pallas import tpu as pltpu

OUT_DIM = 60          # nn.Linear(input_dim, 60)
NEG_SLOPE = 0.05
LANE = 128
SUBLANE = 8
VMEM_BUDGET = 24 * 1024 * 1024   # working-set budget, below the 32 MiB scoped limit


def _perceptron_kernel(x_ref, w_ref, b_ref, o_ref):
    # x_ref: (tm, D) ; w_ref: (D, 60) ; b_ref: (1, 60) ; o_ref: (tm, 60)
    y = jnp.dot(x_ref[...], w_ref[...], preferred_element_type=jnp.float32) + b_ref[...]
    # LeakyReLU(0.05): for 0 < slope < 1, leaky_relu(y) == max(y, slope * y).
    o_ref[...] = jnp.maximum(y, NEG_SLOPE * y).astype(o_ref.dtype)


def _round_up(n: int, m: int) -> int:
    return pl.cdiv(n, m) * m


def _pick_block_m(batch: int, input_dim: int) -> int:
    """Batch tile (multiple of 8) sized against the full VMEM working set."""
    d_lanes = _round_up(input_dim, LANE)            # x last-dim lane padding in VMEM
    # Per batch row: double-buffered x tile + double-buffered out tile
    # (the 60 output lanes occupy a full 128-lane vreg row in VMEM).
    bytes_per_row = 2 * d_lanes * 4 + 2 * LANE * 4
    # Resident (default double-buffered) W + bias.
    w_bytes = 2 * (_round_up(input_dim, SUBLANE) * LANE * 4) + 2 * (SUBLANE * LANE * 4)
    budget = max(VMEM_BUDGET - w_bytes, SUBLANE * bytes_per_row)
    tm = (budget // bytes_per_row // SUBLANE) * SUBLANE
    tm = max(SUBLANE, min(4096, tm))
    # Keep >= 4 grid steps when the batch allows: lets the "parallel" axis shard
    # across v7x's 2 TensorCores and keeps the DMA/compute pipeline busy per core.
    if batch >= 4 * SUBLANE:
        tm = min(tm, _round_up(pl.cdiv(batch, 4), SUBLANE))
    # Never larger than the sublane-rounded batch.
    return min(tm, _round_up(batch, SUBLANE))


def forward_perceptron(x, w, b):
    """x: (B, D) f32, w: (D, 60) f32, b: (60,) f32 -> (B, 60) f32.

    Matches PyTorch: leaky_relu(x @ W_pt.T + b, 0.05) with w == W_pt.T.
    """
    B, D = x.shape
    tm = _pick_block_m(B, D)
    grid = (pl.cdiv(B, tm),)

    return pl.pallas_call(
        _perceptron_kernel,
        out_shape=jax.ShapeDtypeStruct((B, OUT_DIM), jnp.float32),
        grid_spec=pl.GridSpec(
            grid=grid,
            in_specs=[
                pl.BlockSpec((tm, D), lambda i: (i, 0)),         # x: tiled over batch
                pl.BlockSpec((D, OUT_DIM), lambda i: (0, 0)),    # W: resident in VMEM
                pl.BlockSpec((1, OUT_DIM), lambda i: (0, 0)),    # b: resident in VMEM
            ],
            out_specs=pl.BlockSpec((tm, OUT_DIM), lambda i: (i, 0)),
        ),
        compiler_params=pltpu.CompilerParams(
            dimension_semantics=("parallel",),
            vmem_limit_bytes=32 * 1024 * 1024,
        ),
    )(x, w, b.reshape(1, OUT_DIM))


def reference(x, w, b):
    y = x @ w + b
    return jnp.where(y >= 0, y, NEG_SLOPE * y)


if __name__ == "__main__":
    key = jax.random.PRNGKey(0)
    k_x, k_w, k_b = jax.random.split(key, 3)

    batch, input_dim = 8, 32
    x = jax.random.normal(k_x, (batch, input_dim), dtype=jnp.float32)

    # Deterministic synthetic parameters (mimic nn.Linear uniform init bound 1/sqrt(D)).
    bound = 1.0 / jnp.sqrt(jnp.float32(input_dim))
    w = jax.random.uniform(k_w, (input_dim, OUT_DIM), dtype=jnp.float32,
                           minval=-bound, maxval=bound)
    b = jax.random.uniform(k_b, (OUT_DIM,), dtype=jnp.float32,
                           minval=-bound, maxval=bound)

    fwd = jax.jit(forward_perceptron)
    out = jax.block_until_ready(fwd(x, w, b))

    ref = reference(x, w, b)
    assert out.shape == (batch, OUT_DIM)
    assert jnp.allclose(out, ref, atol=1e-5, rtol=1e-5)
    print("KERNEL_OK")
</pallas_src>

<mosaic_0001>
module attributes {stable_mosaic.version = 11 : i64} {
  func.func @_perceptron_kernel(%arg0: i32, %arg1: memref<8x32xf32, #tpu.memory_space<vmem>>, %arg2: memref<32x60xf32, #tpu.memory_space<vmem>>, %arg3: memref<1x60xf32, #tpu.memory_space<vmem>>, %arg4: memref<8x60xf32, #tpu.memory_space<vmem>>) attributes {dimension_semantics = [#tpu.dimension_semantics<parallel>], iteration_bounds = array<i64: 1>, scalar_prefetch = 0 : i64, scratch_operands = 0 : i64, tpu.core_type = #tpu.core_type<tc>, window_params = [{transform_indices = @transform_0, window_bounds = array<i64: 8, 32>}, {pipeline_mode = #tpu.pipeline_mode<synchronous>, transform_indices = @transform_1, window_bounds = array<i64: 32, 60>}, {pipeline_mode = #tpu.pipeline_mode<synchronous>, transform_indices = @transform_2, window_bounds = array<i64: 1, 60>}, {transform_indices = @transform_3, window_bounds = array<i64: 8, 60>}]} {
    %c0 = arith.constant 0 : index
    %c0_0 = arith.constant 0 : index
    %0 = vector.load %arg1[%c0, %c0_0] : memref<8x32xf32, #tpu.memory_space<vmem>>, vector<8x32xf32>
    %c0_1 = arith.constant 0 : index
    %c0_2 = arith.constant 0 : index
    %1 = vector.load %arg2[%c0_1, %c0_2] : memref<32x60xf32, #tpu.memory_space<vmem>>, vector<32x60xf32>
    %cst = arith.constant dense<0.000000e+00> : vector<8x60xf32>
    %2 = tpu.matmul %0, %1, %cst {dimension_numbers = #tpu.dot_dimension_numbers<[1], [0], [0], [1], [0, 0, 1, 1], [], []>} : vector<8x32xf32>, vector<32x60xf32>, vector<8x60xf32> -> vector<8x60xf32>
    %c0_3 = arith.constant 0 : index
    %c0_4 = arith.constant 0 : index
    %3 = vector.load %arg3[%c0_3, %c0_4] : memref<1x60xf32, #tpu.memory_space<vmem>>, vector<1x60xf32>
    %4 = vector.broadcast %3 : vector<1x60xf32> to vector<8x60xf32>
    %5 = arith.addf %2, %4 : vector<8x60xf32>
    %cst_5 = arith.constant 5.000000e-02 : f32
    %6 = vector.broadcast %cst_5 : f32 to vector<8x60xf32>
    %7 = arith.mulf %6, %5 : vector<8x60xf32>
    %8 = arith.maximumf %5, %7 : vector<8x60xf32>
    %c0_6 = arith.constant 0 : index
    %c0_7 = arith.constant 0 : index
    %9 = vector.load %arg4[%c0_6, %c0_7] : memref<8x60xf32, #tpu.memory_space<vmem>>, vector<8x60xf32>
    tpu.vector_store %arg4[%c0_6, %c0_7], %8 {strides = array<i32>} : memref<8x60xf32, #tpu.memory_space<vmem>>, vector<8x60xf32>,
    return
  }
  func.func @transform_0(%arg0: i32) -> (i32, i32) {
    %c0_i32 = arith.constant 0 : i32
    %c0_i32_0 = arith.constant 0 : i32
    return %arg0, %c0_i32 : i32, i32
  }
  func.func @transform_1(%arg0: i32) -> (i32, i32) {
    %c0_i32 = arith.constant 0 : i32
    %c0_i32_0 = arith.constant 0 : i32
    %c0_i32_1 = arith.constant 0 : i32
    return %c0_i32, %c0_i32_0 : i32, i32
  }
  func.func @transform_2(%arg0: i32) -> (i32, i32) {
    %c0_i32 = arith.constant 0 : i32
    %c0_i32_0 = arith.constant 0 : i32
    %c0_i32_1 = arith.constant 0 : i32
    return %c0_i32, %c0_i32_0 : i32, i32
  }
  func.func @transform_3(%arg0: i32) -> (i32, i32) {
    %c0_i32 = arith.constant 0 : i32
    %c0_i32_0 = arith.constant 0 : i32
    return %arg0, %c0_i32 : i32, i32
  }
}

</mosaic_0001>

<bundles_post_ra>
// kernel: forward_perceptron.1
= control target key start
LH: loop header
LB: loop body
LE: loop exit
PB: predicated region body
PF: predicated region fallthrough
CT: control target
= control target key end

     0   :  { %8 = vsyncpa [#allocation3], 0  ;;  %s325_s0 = inlined_call_operand.hbm [shape: f32[8,32], index: 0, kind: input, shape index: {}]   ;;  %s326_s1 = inlined_call_operand.hbm [shape: f32[32,60], index: 1, kind: input, shape index: {}]   ;;  %s327_s2 = inlined_call_operand.vmem [shape: f32[1,60], index: 2, kind: input, shape index: {}]   ;;  %s328_s3 = inlined_call_operand.hbm [shape: f32[8,60], index: 3, kind: output, shape index: {}]  }
   0x1   :  { %9 = vsyncpa [#allocation6], 0 }
   0x2   :  { %10 = vsyncpa [#allocation4], 0  ;;  %s251_s12 = smov [#allocation2]   ;;  %s252_s14 = smov [#allocation5]  }
   0x3   :  { %s17_s13 = sshll.u32 %s251_s12, 4  ;;  %s26_s15 = sshll.u32 %s252_s14, 4  ;;  %s18_s13 = int_to_ptr.vmem [resolvable:$true] %s17_s13  ;;  %s279_s15 = int_to_ptr.vmem [resolvable:$true] %s26_s15 }
   0x4   :  { %s179_s18 = scalar_lea.hbm %s325_s0, 128 }
   0x5   :  { %p180_p0 = scmp.ne.s32.totalorder %s325_s0, %s179_s18  ;;  %p183_p1 = scmp.lt.u32.totalorder %s179_s18, %s325_s0 }
   0x7   :  { %p185_p2 = pnand %p183_p1, %p180_p0 }
   0x9   :  { %188 = shalt.err (!%p185_p2)
}
   0xa   :  { %s189_s23 = scalar_lea.vmem %s18_s13, 128  ;;  %p194_p4 = scmp.lt.s32.totalorder %s18_s13, %s18_s13 }
   0xb   :  { %p190_p3 = scmp.ne.s32.totalorder %s18_s13, %s189_s23  ;;  %p195_p5 = scmp.lt.s32.totalorder %s189_s23, %s189_s23 }
   0xd   :  { %p196_p6 = por %p195_p5, %p194_p4 }
   0xf   :  { %p197_p7 = pnand %p196_p6, %p190_p3 }
  0x11   :  { %200 = shalt.err (!%p197_p7)
}
  0x12   :  { %20 = dma.hbm_to_vmem [thread:$0]  %s325_s0, 128, %s18_s13, [#allocation3]  }
  0x13   :  { %s201_s28 = scalar_lea.hbm %s326_s1, 512 }
  0x14   :  { %p202_p8 = scmp.ne.s32.totalorder %s326_s1, %s201_s28  ;;  %p205_p9 = scmp.lt.u32.totalorder %s201_s28, %s326_s1 }
  0x16   :  { %p207_p10 = pnand %p205_p9, %p202_p8 }
  0x18   :  { %210 = shalt.err (!%p207_p10)
}
  0x19   :  { %s211_s6 = scalar_lea.vmem %s279_s15, 512  ;;  %p216_p12 = scmp.lt.s32.totalorder %s279_s15, %s279_s15 }
  0x1a   :  { %p212_p11 = scmp.ne.s32.totalorder %s279_s15, %s211_s6  ;;  %p217_p13 = scmp.lt.s32.totalorder %s211_s6, %s211_s6 }
  0x1c   :  { %p218_p0 = por %p217_p13, %p216_p12 }
  0x1e   :  { %p219_p1 = pnand %p218_p0, %p212_p11 }
  0x20   :  { %222 = shalt.err (!%p219_p1)
}
  0x21   :  { %s253_s0 = smov 128   ;;  %s254_s7 = smov 8  }
  0x22   :  { %32 = dma.hbm_to_vmem [thread:$0]  %s326_s1, 512, %s279_s15, [#allocation6], %s253_s0, %s253_s0, %s254_s7  }
  0x23   :  { %245 = dma.done.wait [#allocation3], 128  }
  0x24   :  { %246 = vsyncadd [#allocation3], 4294967168 }
  0x25   :  { %247 = dma.done.wait [#allocation6], 512  }
  0x26   :  { %248 = vsyncadd [#allocation6], 4294966784  ;;  %v255_v0 = vmov 0.0|0.0   ;;  %vm256_vm0 = vmmov 0   ;;  %v257_v1 = vmov 0.0   ;;  %v42_v2 = vld [vmem:[#allocation5] sm:$0xff] }
  0x27   :  { %165 = vmatprep.subr.bf16.mxu0 %v255_v0  ;;  %162 = vmatprep.mubr.msk.f32.mxu0 %vm256_vm0, %v257_v1  ;;  %v43_v3 = vld [vmem:[#allocation5 + $0x8] sm:$0xff]  ;;  %v44_v4 = vld [vmem:[#allocation5 + $0x10] sm:$0xff]  ;;  %v45_v6 = vld [vmem:[#allocation5 + $0x18] sm:$0xff]  ;;  %vm53_vm1 = vcmask 261120   ;;  %s258_s11 = smov [#allocation7]   ;;  %vm129_vm2 = vcmask 490496  }
  0x28   :  { %v166_v5 = vpack.c.bf16 %v43_v3, %v42_v2  ;;  %v169_v7 = vpack.c.bf16 %v45_v6, %v44_v4  ;;  %v41_v8 = vld [vmem:[#allocation2] sm:$0xff]  ;;  %s137_s12 = sshll.u32 %s258_s11, 4  ;;  %s138_s12 = int_to_ptr.vmem [resolvable:$true] %s137_s12 }
  0x29   :  { %v147_v9 = vld [vmem:[%s327_s2] ss:$0 sm:$0xff]  ;;  %s223_s13 = scalar_lea.vmem %s138_s12, 128  ;;  %p228_p3 = scmp.lt.s32.totalorder %s138_s12, %s138_s12 }
  0x2a   :  { %167 = vmatpush3.bf16.msra.mxu0 %v166_v5  ;;  %p224_p2 = scmp.ne.s32.totalorder %s138_s12, %s223_s13  ;;  %p229_p4 = scmp.lt.s32.totalorder %s223_s13, %s223_s13 }
  0x2b   :  { %168 = vmatprep.subr.bf16.mxu0 %v255_v0 }
  0x2c   :  { %p230_p5 = por %p229_p4, %p228_p3 }
  0x2e   :  { %170 = vmatpush3.bf16.msra.mxu0 %v169_v7  ;;  %p231_p6 = pnand %p230_p5, %p224_p2 }
  0x31   :  { %163 = vmatmul.mubr.msk.f32.vlgmr.msra.gmra.mrb[0].mxu0 %vm53_vm1, %v41_v8 }
 0x104   :  { %v123_v10 = vpop.f32.mrb[0].mxu0 }
 0x105   :  { %v124_v11 = vadd.f32 %v147_v9, %v123_v10  ;;  %v164_v12 = vpop.f32.mrb[1].mxu0 }
 0x107   :  { %v127_v13 = vmul.f32 0.05, %v124_v11 }
 0x109   :  { %v128_v14 = vmax.f32 %v124_v11, %v127_v13 }
 0x10b   :  { %130 = vst.msk [vmem:[#allocation7] sm:$0xff] %vm129_vm2, %v128_v14 }
 0x10c   :  { %234 = shalt.err (!%p231_p6)
}
 0x10d   :  { %s235_s2 = scalar_lea.hbm %s328_s3, 128 }
 0x10e   :  { %p236_p7 = scmp.ne.s32.totalorder %s328_s3, %s235_s2  ;;  %p239_p8 = scmp.lt.u32.totalorder %s235_s2, %s328_s3 }
 0x110   :  { %p241_p9 = pnand %p239_p8, %p236_p7 }
 0x112   :  { %244 = shalt.err (!%p241_p9)
}
 0x113   :  { %140 = dma.vmem_to_hbm [thread:$0]  %s138_s12, 128, %s328_s3, [#allocation4]  }
 0x114   :  { %249 = dma.done.wait [#allocation4], 128  }
 0x115   :  { %250 = vsyncadd [#allocation4], 4294967168 }
 0x116   :  { %144 = vsyncpa [#allocation3], 1 }
 0x117   :  { %145 = vsyncpa [#allocation6], 1 }
 0x118   :  { %146 = vsyncpa [#allocation4], 1 }

</bundles_post_ra>
